<compile_context>
chip_gen: v7x
topology: tpu7x:2x2x1
jax: 0.10.0
libtpu: 0.0.40
codegen_flags: <defaults>
</compile_context>

<pallas_src>
import functools

import jax
import jax.numpy as jnp
from jax import lax
from jax.experimental import pallas as pl
from jax.experimental.pallas import tpu as pltpu


_SUBLANE = 8
_LANE = 128
# Per-input-block byte target. Double-buffered => ~8 MiB of VMEM for the
# input stream, inside the 16 MiB scoped default on v5e (32 MiB on v6e/v7x).
# ~4 MiB blocks measure ~85-86% of HBM roofline for f32 streaming.
_TARGET_BLOCK_BYTES = 4 * 1024 * 1024


def _reduce_sum_kernel(x_ref, out_ref, acc_ref, *, rows, cols, tile_r, tile_c):
    i = pl.program_id(0)  # row-block index  ("parallel": megacore-shardable)
    j = pl.program_id(1)  # col-block index  ("arbitrary": reduction carrier)

    @pl.when(j == 0)
    def _init():
        acc_ref[...] = jnp.zeros_like(acc_ref)

    x = x_ref[...].astype(jnp.float32)  # (tile_r, tile_c)

    # Mask out-of-bounds rows/cols of edge blocks. These are *static* Python
    # checks: the mask code is only emitted when the tile doesn't divide the
    # array, and it is pure VPU work hidden under the HBM stream.
    if rows % tile_r != 0:
        rid = i * tile_r + lax.broadcasted_iota(jnp.int32, (tile_r, tile_c), 0)
        x = jnp.where(rid < rows, x, 0.0)
    if cols % tile_c != 0:
        cid = j * tile_c + lax.broadcasted_iota(jnp.int32, (tile_r, tile_c), 1)
        x = jnp.where(cid < cols, x, 0.0)

    # Vreg-shaped partial sums: fold sublane groups with elementwise (VPU)
    # adds into the resident accumulator -- no per-step cross-lane reduce.
    acc_ref[...] += jnp.sum(
        x.reshape(tile_r // _SUBLANE, _SUBLANE, tile_c), axis=0)

    @pl.when(j == pl.num_programs(1) - 1)
    def _finalize():
        # One cross-lane/sublane reduction per row block; store the scalar
        # partial broadcast into a single dense (8, 128) tile (unmasked vst).
        out_ref[...] = jnp.broadcast_to(
            jnp.sum(acc_ref[...]), (1, _SUBLANE, _LANE))


def reduce_sum(a: jax.Array) -> jax.Array:
    """torch.sum(a): full reduction of a rank-3 float32 array to a scalar."""
    assert a.ndim == 3, "ReduceSumModule expects a rank-3 input"
    B, M, N = a.shape
    rows, cols = B * M, N
    x = a.reshape(rows, cols)  # free reshape for a contiguous array
    itemsize = 4  # streamed / accumulated as float32

    # Column tile: keep the full lane extent unless even a single 8-row
    # stripe would blow the block byte budget (then tile columns in
    # multiples of 128 lanes).
    if _SUBLANE * cols * itemsize <= _TARGET_BLOCK_BYTES:
        tile_c = cols
    else:
        tile_c = max(
            _LANE,
            (_TARGET_BLOCK_BYTES // (_SUBLANE * itemsize * _LANE)) * _LANE)

    # Row tile: as many rows as fit the byte budget (multiple of 8), but no
    # more than the sublane-rounded number of rows actually present.
    tile_r = _TARGET_BLOCK_BYTES // (tile_c * itemsize)
    tile_r = max(_SUBLANE, (tile_r // _SUBLANE) * _SUBLANE)
    tile_r = min(tile_r, pl.cdiv(rows, _SUBLANE) * _SUBLANE)

    nr = pl.cdiv(rows, tile_r)
    nc = pl.cdiv(cols, tile_c)

    kernel = functools.partial(
        _reduce_sum_kernel, rows=rows, cols=cols, tile_r=tile_r, tile_c=tile_c)

    partials = pl.pallas_call(
        kernel,
        out_shape=jax.ShapeDtypeStruct((nr, _SUBLANE, _LANE), jnp.float32),
        grid_spec=pltpu.PrefetchScalarGridSpec(
            num_scalar_prefetch=0,
            grid=(nr, nc),
            in_specs=[pl.BlockSpec((tile_r, tile_c), lambda i, j: (i, j))],
            out_specs=pl.BlockSpec(
                (1, _SUBLANE, _LANE), lambda i, j: (i, 0, 0)),
            scratch_shapes=[pltpu.VMEM((_SUBLANE, tile_c), jnp.float32)],
        ),
        compiler_params=pltpu.CompilerParams(
            # Row blocks are independent (own accumulator lifecycle + disjoint
            # output tiles) -> shardable across TensorCores on v7x.  The
            # column axis carries the per-row-block accumulator -> serial.
            dimension_semantics=("parallel", "arbitrary"),
        ),
    )(x)

    # Combine the tiny per-row-block partials (a few dozen scalars at most);
    # fused by XLA, negligible next to the streamed bytes.  torch.sum returns
    # a 0-dim tensor; jnp.sum matches with a 0-dim array.
    return jnp.sum(partials[:, 0, 0])


if __name__ == "__main__":
    key = jax.random.PRNGKey(0)
    # Small rank-3 input consistent with the module's ([-1, -1, -1], float32) arg.
    a = jax.random.normal(key, (2, 8, 32), dtype=jnp.float32)

    result = reduce_sum(a)
    jax.block_until_ready(result)

    expected = jnp.sum(a)
    assert result.shape == (), result.shape
    assert jnp.allclose(result, expected, rtol=1e-5, atol=1e-5), (result, expected)
    print("KERNEL_OK")
</pallas_src>

<mosaic_0001>
module attributes {stable_mosaic.version = 11 : i64} {
  func.func @_reduce_sum_kernel(%arg0: i32, %arg1: i32, %arg2: memref<16x32xf32, #tpu.memory_space<vmem>>, %arg3: memref<1x8x128xf32, #tpu.memory_space<vmem>>, %arg4: memref<8x32xf32, #tpu.memory_space<vmem>>) attributes {dimension_semantics = [#tpu.dimension_semantics<parallel>, #tpu.dimension_semantics<arbitrary>], iteration_bounds = array<i64: 1, 1>, scalar_prefetch = 0 : i64, scratch_operands = 1 : i64, tpu.core_type = #tpu.core_type<tc>, window_params = [{transform_indices = @transform_0, window_bounds = array<i64: 16, 32>}, {transform_indices = @transform_1, window_bounds = array<i64: 1, 8, 128>}]} {
    %c0_i32 = arith.constant 0 : i32
    %0 = arith.cmpi eq, %arg1, %c0_i32 : i32
    %1 = arith.extui %0 : i1 to i32
    %c0_i32_0 = arith.constant 0 : i32
    %2 = arith.cmpi ne, %1, %c0_i32_0 : i32
    scf.if %2 {
      %cst_8 = arith.constant 0.000000e+00 : f32
      %12 = vector.broadcast %cst_8 : f32 to vector<8x32xf32>
      %c0_9 = arith.constant 0 : index
      %c0_10 = arith.constant 0 : index
      %13 = vector.load %arg4[%c0_9, %c0_10] : memref<8x32xf32, #tpu.memory_space<vmem>>, vector<8x32xf32>
      tpu.vector_store %arg4[%c0_9, %c0_10], %12 {strides = array<i32>} : memref<8x32xf32, #tpu.memory_space<vmem>>, vector<8x32xf32>,
    } else {
    }
    %c0 = arith.constant 0 : index
    %c0_1 = arith.constant 0 : index
    %3 = vector.load %arg2[%c0, %c0_1] : memref<16x32xf32, #tpu.memory_space<vmem>>, vector<16x32xf32>
    %c0_2 = arith.constant 0 : index
    %c0_3 = arith.constant 0 : index
    %4 = vector.load %arg4[%c0_2, %c0_3] : memref<8x32xf32, #tpu.memory_space<vmem>>, vector<8x32xf32>
    %5 = vector.shape_cast %3 : vector<16x32xf32> to vector<2x8x32xf32>
    %cst = arith.constant dense<0.000000e+00> : vector<8x32xf32>
    %6 = vector.multi_reduction <add>, %5, %cst [0] : vector<2x8x32xf32> to vector<8x32xf32>
    %7 = arith.addf %4, %6 : vector<8x32xf32>
    %c0_4 = arith.constant 0 : index
    %c0_5 = arith.constant 0 : index
    %8 = vector.load %arg4[%c0_4, %c0_5] : memref<8x32xf32, #tpu.memory_space<vmem>>, vector<8x32xf32>
    tpu.vector_store %arg4[%c0_4, %c0_5], %7 {strides = array<i32>} : memref<8x32xf32, #tpu.memory_space<vmem>>, vector<8x32xf32>,
    %c0_i32_6 = arith.constant 0 : i32
    %9 = arith.cmpi eq, %arg1, %c0_i32_6 : i32
    %10 = arith.extui %9 : i1 to i32
    %c0_i32_7 = arith.constant 0 : i32
    %11 = arith.cmpi ne, %10, %c0_i32_7 : i32
    scf.if %11 {
      %c0_8 = arith.constant 0 : index
      %c0_9 = arith.constant 0 : index
      %12 = vector.load %arg4[%c0_8, %c0_9] : memref<8x32xf32, #tpu.memory_space<vmem>>, vector<8x32xf32>
      %13 = vector.shape_cast %12 : vector<8x32xf32> to vector<1x8x32xf32>
      %cst_10 = arith.constant dense<0.000000e+00> : vector<1xf32>
      %14 = vector.multi_reduction <add>, %13, %cst_10 [1, 2] : vector<1x8x32xf32> to vector<1xf32>
      %15 = vector.shape_cast %14 : vector<1xf32> to vector<1x1x1xf32>
      %16 = vector.extract %15[0, 0, 0] : f32 from vector<1x1x1xf32>
      %17 = vector.broadcast %16 : f32 to vector<1x8x128xf32>
      %c0_11 = arith.constant 0 : index
      %c0_12 = arith.constant 0 : index
      %c0_13 = arith.constant 0 : index
      %18 = vector.load %arg3[%c0_11, %c0_12, %c0_13] : memref<1x8x128xf32, #tpu.memory_space<vmem>>, vector<1x8x128xf32>
      tpu.vector_store %arg3[%c0_11, %c0_12, %c0_13], %17 {strides = array<i32>} : memref<1x8x128xf32, #tpu.memory_space<vmem>>, vector<1x8x128xf32>,
    } else {
    }
    return
  }
  func.func @transform_0(%arg0: i32, %arg1: i32) -> (i32, i32) {
    %c0_i32 = arith.constant 0 : i32
    return %arg0, %arg1 : i32, i32
  }
  func.func @transform_1(%arg0: i32, %arg1: i32) -> (i32, i32, i32) {
    %c0_i32 = arith.constant 0 : i32
    %c0_i32_0 = arith.constant 0 : i32
    %c0_i32_1 = arith.constant 0 : i32
    return %arg0, %c0_i32, %c0_i32_0 : i32, i32, i32
  }
}

</mosaic_0001>

<bundles_post_ra>
// kernel: tpu_custom_call.1
= control target key start
LH: loop header
LB: loop body
LE: loop exit
PB: predicated region body
PF: predicated region fallthrough
CT: control target
= control target key end

     0   :  { %6 = vsyncpa [#allocation4], 0  ;;  %s163_s0 = inlined_call_operand.hbm [shape: f32[16,32], index: 0, kind: input, shape index: {}]   ;;  %s164_s1 = inlined_call_operand.hbm [shape: f32[1,8,128], index: 1, kind: output, shape index: {}]  }
   0x1   :  { %7 = vsyncpa [#allocation5], 0  ;;  %s124_s6 = smov [#allocation3]   ;;  %s76_s10 = scalar_lea.hbm %s163_s0, 256 }
   0x2   :  { %s13_s7 = sshll.u32 %s124_s6, 4  ;;  %p77_p0 = scmp.ne.s32.totalorder %s163_s0, %s76_s10  ;;  %s14_s7 = int_to_ptr.vmem [resolvable:$true] %s13_s7 }
   0x3   :  { %p80_p1 = scmp.lt.u32.totalorder %s76_s10, %s163_s0 }
   0x5   :  { %p82_p2 = pnand %p80_p1, %p77_p0 }
   0x7   :  { %85 = shalt.err (!%p82_p2)
}
   0x8   :  { %s86_s15 = scalar_lea.vmem %s14_s7, 256  ;;  %p91_p4 = scmp.lt.s32.totalorder %s14_s7, %s14_s7 }
   0x9   :  { %p87_p3 = scmp.ne.s32.totalorder %s14_s7, %s86_s15  ;;  %p92_p5 = scmp.lt.s32.totalorder %s86_s15, %s86_s15 }
   0xb   :  { %p93_p6 = por %p92_p5, %p91_p4 }
   0xd   :  { %p94_p7 = pnand %p93_p6, %p87_p3 }
   0xf   :  { %97 = shalt.err (!%p94_p7)
}
  0x10   :  { %s125_s16 = smov 128   ;;  %s126_s17 = smov 8  }
  0x11   :  { %19 = dma.hbm_to_vmem [thread:$0]  %s163_s0, 256, %s14_s7, [#allocation4], %s125_s16, %s125_s16, %s126_s17  }
  0x12   :  { %120 = dma.done.wait [#allocation4], 256  }
  0x13   :  { %121 = vsyncadd [#allocation4], 4294967040  ;;  %vm27_vm0 = vcmask 261120   ;;  %v127_v0 = vmov 0.0   ;;  %v29_v1 = vld [vmem:[#allocation3] sm:$0xff]  ;;  %v30_v2 = vld [vmem:[#allocation3 + $0x8] sm:$0xff] }
  0x14   :  { %28 = vst.msk [vmem:[#allocation2] sm:$0xff] %vm27_vm0, %v127_v0  ;;  %v33_v4 = vsel %vm27_vm0, %v29_v1, 0.0  ;;  %v34_v5 = vsel %vm27_vm0, %v30_v2, 0.0  ;;  %s128_s0 = smov [#allocation6]  }
  0x15   :  { %v35_v6 = vadd.f32 %v34_v5, %v33_v4  ;;  %s60_s20 = sshll.u32 %s128_s0, 4  ;;  %s61_s20 = int_to_ptr.vmem [resolvable:$true] %s60_s20 }
  0x16   :  { %s98_s22 = scalar_lea.vmem %s61_s20, 128  ;;  %p103_p9 = scmp.lt.s32.totalorder %s61_s20, %s61_s20 }
  0x17   :  { %p99_p8 = scmp.ne.s32.totalorder %s61_s20, %s98_s22  ;;  %p104_p10 = scmp.lt.s32.totalorder %s98_s22, %s98_s22 }
  0x19   :  { %p105_p11 = por %p104_p10, %p103_p9 }
  0x1b   :  { %v31_v3 = vld [vmem:[#allocation2] sm:$0xff]  ;;  %p106_p12 = pnand %p105_p11, %p99_p8 }
  0x1c   :  { %v36_v7 = vadd.f32 %v35_v6, %v31_v3 }
  0x1e   :  { %37 = vst.msk [vmem:[#allocation2] sm:$0xff] %vm27_vm0, %v36_v7 }
  0x25   :  { %v41_v8 = vld [vmem:[#allocation2] sm:$0xff] }
  0x26   :  { %v42_v9 = vsel %vm27_vm0, %v41_v8, 0.0 }
  0x27   :  { %43 = vadd.xlane.f32.xlu0 %v42_v9 }
  0xb4   :  { %v44_v10 = vpop.xlane.xlu0 %43 }
  0xb5   :  { %v45_v11 = vrot.slane %v44_v10, 4 }
  0xb7   :  { %v46_v12 = vadd.f32 %v45_v11, %v44_v10 }
  0xb9   :  { %v47_v13 = vrot.slane %v46_v12, 2 }
  0xbb   :  { %v48_v14 = vadd.f32 %v47_v13, %v46_v12 }
  0xbd   :  { %v49_v15 = vrot.slane %v48_v14, 1 }
  0xbf   :  { %v50_v16 = vadd.f32 %v49_v15, %v48_v14 }
  0xc1   :  { %69 = vpush %v50_v16 }
  0xf2   :  { %s70_s21 = spop %69 }
  0xf3   :  { %v52_v17 = vstv %s70_s21 }
  0xf4   :  { %53 = vst [vmem:[#allocation6] sm:$0xff] %v52_v17 }
  0xf5   :  { %109 = shalt.err (!%p106_p12)
}
  0xf6   :  { %s110_s25 = scalar_lea.hbm %s164_s1, 128 }
  0xf7   :  { %p111_p13 = scmp.ne.s32.totalorder %s164_s1, %s110_s25  ;;  %p114_p0 = scmp.lt.u32.totalorder %s110_s25, %s164_s1 }
  0xf9   :  { %p116_p1 = pnand %p114_p0, %p111_p13 }
  0xfb   :  { %119 = shalt.err (!%p116_p1)
}
  0xfc   :  { %63 = dma.vmem_to_hbm [thread:$0]  %s61_s20, 128, %s164_s1, [#allocation5]  }
  0xfd   :  { %122 = dma.done.wait [#allocation5], 128  }
  0xfe   :  { %123 = vsyncadd [#allocation5], 4294967168 }
  0xff   :  { %67 = vsyncpa [#allocation4], 1 }
 0x100   :  { %68 = vsyncpa [#allocation5], 1 }

</bundles_post_ra>
